<compile_context>
chip_gen: v5e
topology: v5e:2x2
jax: 0.10.0
libtpu: 0.0.40
codegen_flags: <defaults>
</compile_context>

<pallas_src>
import functools

import jax
import jax.numpy as jnp
from jax.experimental import pallas as pl
from jax.experimental.pallas import tpu as pltpu


_LANES = 128
_MIN_PALLAS_ELEMS = 4096              # below this, plain jnp beats the launch


# --------------------------------------------------------------------------
# Kernels
# --------------------------------------------------------------------------
def _review_classifier_kernel_single(x_ref, w_ref, b_ref, o_ref, *,
                                     apply_sigmoid: bool):
    """Whole feature dim in one tile: no reduction grid axis, no scratch."""
    # x_ref: (TM, F)   w_ref: (1, F)   b_ref: (1,) in SMEM   o_ref: (TM, 1)
    prod = x_ref[...].astype(jnp.float32) * w_ref[...].astype(jnp.float32)
    y = jnp.sum(prod, axis=-1, keepdims=True) + b_ref[0]
    if apply_sigmoid:
        y = jax.nn.sigmoid(y)
    o_ref[...] = y.astype(o_ref.dtype)


def _review_classifier_kernel_ktiled(x_ref, w_ref, b_ref, o_ref, acc_ref, *,
                                     apply_sigmoid: bool, lane_chunks: int):
    """K-tiled path with a lane-dense (TM, 128) f32 accumulator."""
    # x_ref: (TM, TK)  w_ref: (1, TK)  b_ref: (1,) SMEM  o_ref: (TM, 1)
    # acc_ref: (TM, 128) f32 scratch, resident across the reduction axis.
    k = pl.program_id(1)

    @pl.when(k == 0)
    def _init():
        acc_ref[...] = jnp.zeros_like(acc_ref)

    prod = x_ref[...].astype(jnp.float32) * w_ref[...].astype(jnp.float32)
    # Fold TK lanes into 128 lane-dense partials: pure VPU adds on
    # lane-aligned static slices (no XLU, no masked (TM,1) RMW per step).
    partial = prod[:, 0:_LANES]
    for c in range(1, lane_chunks):
        partial = partial + prod[:, c * _LANES:(c + 1) * _LANES]
    acc_ref[...] += partial

    @pl.when(k == pl.num_programs(1) - 1)
    def _finalize():
        # Single cross-lane reduce per batch tile.
        y = jnp.sum(acc_ref[...], axis=-1, keepdims=True) + b_ref[0]
        if apply_sigmoid:
            y = jax.nn.sigmoid(y)
        o_ref[...] = y.astype(o_ref.dtype)


# --------------------------------------------------------------------------
# Tiling / hardware heuristics
# --------------------------------------------------------------------------
def _round_up(x, m):
    return ((x + m - 1) // m) * m


def _sublane_multiple(dtype):
    itemsize = jnp.dtype(dtype).itemsize
    if itemsize >= 4:
        return 8
    if itemsize == 2:
        return 16
    return 32


def _detect_generation():
    """Best-effort TPU generation detection; never raises."""
    try:
        kind = jax.devices()[0].device_kind.lower()
    except Exception:
        return "other"
    if "v7" in kind or "7x" in kind:
        return "v7x"
    if "v6" in kind:
        return "v6e"
    if "v5e" in kind or "v5 lite" in kind or "v5lite" in kind:
        return "v5e"
    return "other"


def _x_budget_bytes(gen):
    """Total budget for the double-buffered x stream (2 buffers)."""
    if gen == "v6e":
        return 24 << 20            # 12 MiB per buffer (128 MiB physical VMEM)
    if gen == "v7x":
        return 16 << 20            # 8 MiB per buffer  (only 64 MiB physical)
    if gen == "v5e":
        return 12 << 20            # 6 MiB per buffer
    return 16 << 20


def _choose_tiles(batch, num_features, x_dtype, tm, tk, x_budget, gen):
    itemsize = jnp.dtype(x_dtype).itemsize
    sub = _sublane_multiple(x_dtype)
    padded_sub = _round_up(batch, sub)

    # ---- feature tile: prefer the whole F (collapses the reduction axis, no
    # accumulator, no per-step weight re-DMA).  Only K-tile when even a
    # minimum-height batch tile would blow the double-buffer budget. ----
    if tk is None:
        tk = num_features
        if 2 * sub * num_features * itemsize > x_budget:
            for cand in (8192, 4096, 2048, 1024, 512, 256, 128):
                if (num_features % cand == 0
                        and 2 * sub * cand * itemsize <= x_budget):
                    tk = cand
                    break
    else:
        if num_features % tk != 0 or not (tk == num_features or tk % 128 == 0):
            raise ValueError("tk must divide num_features and be a multiple "
                             "of 128 (or equal num_features)")

    # ---- batch tile ----
    if tm is not None:
        tm = max(sub, _round_up(tm, sub))
        n_tiles = max(1, pl.cdiv(padded_sub, tm))
    else:
        tm_target = max(sub, x_budget // (2 * itemsize * tk))
        tm_target = max(sub, (tm_target // sub) * sub)
        n_tiles = max(1, pl.cdiv(padded_sub, tm_target))
        # v7x: ensure >= 2 batch tiles so CORE_PARALLEL can feed both TCs.
        if gen == "v7x" and n_tiles == 1 and padded_sub >= 2 * sub:
            n_tiles = 2
        # Even out the tiles (keeps wrapper batch padding tiny).
        tm = max(sub, _round_up(pl.cdiv(padded_sub, n_tiles), sub))

    padded_batch = tm * n_tiles
    return tm, tk, padded_batch, n_tiles


# --------------------------------------------------------------------------
# Public wrapper (ReviewClassifier.forward equivalent)
# --------------------------------------------------------------------------
def review_classifier_forward(x, weight, bias, apply_sigmoid: bool = False,
                              *, tm=None, tk=None):
    """Equivalent to ReviewClassifier.forward.

    x: (batch, num_features) f32 or bf16; weight: (1, num_features)
    (nn.Linear layout); bias: (1,); apply_sigmoid: static bool.
    Returns the .squeeze()'d logits: shape (batch,) (scalar if batch == 1).
    """
    batch, num_features = x.shape
    w2d = weight.reshape(1, num_features)
    b1d = bias.reshape(1).astype(jnp.float32)

    # Tiny shapes: fixed pallas_call overhead dwarfs ~2*B*F flops.
    if batch * num_features < _MIN_PALLAS_ELEMS and tm is None and tk is None:
        y = jnp.sum(x.astype(jnp.float32) * w2d.astype(jnp.float32),
                    axis=-1) + b1d[0]
        if apply_sigmoid:
            y = jax.nn.sigmoid(y)
        return jnp.squeeze(y)

    gen = _detect_generation()
    x_budget = _x_budget_bytes(gen)
    tm, tk, padded_batch, n_tiles = _choose_tiles(
        batch, num_features, x.dtype, tm, tk, x_budget, gen)
    k_grid = num_features // tk

    # TODO(synk): wrapper-side jnp.pad copies x; a ragged last tile would
    # avoid it, but padding is <= a few sublane rows here.
    if padded_batch != batch:
        x_padded = jnp.pad(x, ((0, padded_batch - batch), (0, 0)))
    else:
        x_padded = x

    x_itemsize = jnp.dtype(x.dtype).itemsize
    w_itemsize = jnp.dtype(w2d.dtype).itemsize

    # VMEM accounting (double-buffered x/w/out, scratch, f32 upcast temp).
    x_block = tm * tk * x_itemsize
    w_block = 8 * _round_up(tk, _LANES) * w_itemsize
    out_block = tm * _LANES * 4                 # (tm, 1) f32 pads to 128 lanes
    acc_block = tm * _LANES * 4 if k_grid > 1 else 0
    f32_temp = tm * tk * 4
    needed = 2 * (x_block + w_block + out_block) + acc_block + f32_temp
    vmem_cap = (56 << 20) if gen == "v7x" else (96 << 20)
    vmem_limit = int(min(vmem_cap, max(32 << 20, needed + (6 << 20))))

    if k_grid == 1:
        grid = (n_tiles,)
        in_specs = [
            pl.BlockSpec((tm, num_features), lambda i: (i, 0)),
            pl.BlockSpec((1, num_features), lambda i: (0, 0)),
            pl.BlockSpec(memory_space=pltpu.MemorySpace.SMEM),
        ]
        out_specs = pl.BlockSpec((tm, 1), lambda i: (i, 0))
        scratch_shapes = ()
        kernel = functools.partial(_review_classifier_kernel_single,
                                   apply_sigmoid=apply_sigmoid)
    else:
        grid = (n_tiles, k_grid)
        in_specs = [
            pl.BlockSpec((tm, tk), lambda i, k: (i, k)),
            pl.BlockSpec((1, tk), lambda i, k: (0, k)),
            pl.BlockSpec(memory_space=pltpu.MemorySpace.SMEM),
        ]
        out_specs = pl.BlockSpec((tm, 1), lambda i, k: (i, 0))
        scratch_shapes = (pltpu.VMEM((tm, _LANES), jnp.float32),)
        kernel = functools.partial(_review_classifier_kernel_ktiled,
                                   apply_sigmoid=apply_sigmoid,
                                   lane_chunks=tk // _LANES)

    # Batch-axis semantics: CORE_PARALLEL on v7x (2 TCs) when we actually have
    # >= 2 batch tiles; plain "parallel" everywhere else.
    core_parallel = getattr(pltpu, "CORE_PARALLEL", None)
    batch_sem = "parallel"
    if (gen == "v7x" and k_grid == 1 and n_tiles >= 2
            and core_parallel is not None):
        batch_sem = core_parallel
    dim_sems = (batch_sem,) if k_grid == 1 else (batch_sem, "arbitrary")
    fallback_sems = ("parallel",) if k_grid == 1 else ("parallel", "arbitrary")

    cost = pl.CostEstimate(
        flops=2 * padded_batch * num_features,
        transcendentals=padded_batch if apply_sigmoid else 0,
        bytes_accessed=(padded_batch * num_features * x_itemsize
                        + num_features * w_itemsize + padded_batch * 4 + 4))

    def _launch(sems):
        return pl.pallas_call(
            kernel,
            out_shape=jax.ShapeDtypeStruct((padded_batch, 1), jnp.float32),
            grid_spec=pltpu.PrefetchScalarGridSpec(
                num_scalar_prefetch=0,
                grid=grid,
                in_specs=in_specs,
                out_specs=out_specs,
                scratch_shapes=scratch_shapes),
            compiler_params=pltpu.CompilerParams(
                dimension_semantics=sems,
                vmem_limit_bytes=vmem_limit),
            cost_estimate=cost,
        )(x_padded, w2d, b1d)

    try:
        out = _launch(dim_sems)
    except Exception:
        # Conservative fallback if CORE_PARALLEL lowering is rejected.
        if batch_sem == "parallel":
            raise
        out = _launch(fallback_sems)

    y = out[:batch, 0]
    return jnp.squeeze(y)   # mirrors PyTorch .squeeze()


# --------------------------------------------------------------------------
# Self-test
# --------------------------------------------------------------------------
if __name__ == "__main__":
    key = jax.random.PRNGKey(0)
    kx, kw, kb, kx2, kx3, kw3 = jax.random.split(key, 6)

    def ref_forward(xr, wr, br, sig):
        yr = jnp.sum(xr.astype(jnp.float32)
                     * wr.reshape(1, -1).astype(jnp.float32),
                     axis=-1) + br.reshape(-1)[0].astype(jnp.float32)
        if sig:
            yr = jax.nn.sigmoid(yr)
        return jnp.squeeze(yr)

    batch, feats = 256, 256
    x = jax.random.normal(kx, (batch, feats), dtype=jnp.float32)
    weight = jax.random.normal(kw, (1, feats), dtype=jnp.float32) * 0.1
    bias = jax.random.normal(kb, (1,), dtype=jnp.float32) * 0.1

    # Case 1: default tiling (single grid axis, no accumulator), no sigmoid.
    y = jax.block_until_ready(review_classifier_forward(x, weight, bias))
    assert y.shape == (batch,)
    assert jnp.allclose(y, ref_forward(x, weight, bias, False),
                        atol=1e-4, rtol=1e-4), "linear path mismatch"

    # Case 2: sigmoid path.
    y_sig = jax.block_until_ready(
        review_classifier_forward(x, weight, bias, apply_sigmoid=True))
    assert jnp.allclose(y_sig, ref_forward(x, weight, bias, True),
                        atol=1e-4, rtol=1e-4), "sigmoid path mismatch"

    # Case 3: explicit K-tiling + batch padding (lane-dense accumulator path).
    batch2 = 200
    x2 = jax.random.normal(kx2, (batch2, feats), dtype=jnp.float32)
    y2 = jax.block_until_ready(
        review_classifier_forward(x2, weight, bias, apply_sigmoid=True,
                                  tm=128, tk=128))
    assert y2.shape == (batch2,)
    assert jnp.allclose(y2, ref_forward(x2, weight, bias, True),
                        atol=1e-4, rtol=1e-4), "tiled/padded path mismatch"

    # Case 4: tiny-shape fallback (no pallas launch).
    x3s, w3s = x[:8, :32], weight[:, :32]
    y3s = jax.block_until_ready(review_classifier_forward(x3s, w3s, bias))
    assert y3s.shape == (8,)
    assert jnp.allclose(y3s, ref_forward(x3s, w3s, bias, False),
                        atol=1e-4, rtol=1e-4), "fallback path mismatch"

    # Case 5: bf16 input streamed natively + K-tiled path with >1 lane chunk.
    feats3, batch3 = 512, 100
    x4 = jax.random.normal(kx3, (batch3, feats3),
                           dtype=jnp.float32).astype(jnp.bfloat16)
    w4 = jax.random.normal(kw3, (1, feats3), dtype=jnp.float32) * 0.1
    y4 = jax.block_until_ready(
        review_classifier_forward(x4, w4, bias, tm=64, tk=256))
    assert y4.shape == (batch3,)
    assert jnp.allclose(y4, ref_forward(x4, w4, bias, False),
                        atol=1e-3, rtol=1e-3), "bf16 path mismatch"

    print("KERNEL_OK")
</pallas_src>

<mosaic_0001>
module attributes {stable_mosaic.version = 11 : i64} {
  func.func @_review_classifier_kernel_single(%arg0: i32, %arg1: memref<256x256xf32, #tpu.memory_space<vmem>>, %arg2: memref<1x256xf32, #tpu.memory_space<vmem>>, %arg3: memref<1xf32, #tpu.memory_space<smem>>, %arg4: memref<256x1xf32, #tpu.memory_space<vmem>>) attributes {dimension_semantics = [#tpu.dimension_semantics<parallel>], iteration_bounds = array<i64: 1>, scalar_prefetch = 0 : i64, scratch_operands = 0 : i64, tpu.core_type = #tpu.core_type<tc>, window_params = [{transform_indices = @transform_0, window_bounds = array<i64: 256, 256>}, {pipeline_mode = #tpu.pipeline_mode<synchronous>, transform_indices = @transform_1, window_bounds = array<i64: 1, 256>}, {transform_indices = @transform_2, window_bounds = array<i64: 1>}, {transform_indices = @transform_3, window_bounds = array<i64: 256, 1>}]} {
    %c0 = arith.constant 0 : index
    %c0_0 = arith.constant 0 : index
    %0 = vector.load %arg1[%c0, %c0_0] : memref<256x256xf32, #tpu.memory_space<vmem>>, vector<256x256xf32>
    %c0_1 = arith.constant 0 : index
    %c0_2 = arith.constant 0 : index
    %1 = vector.load %arg2[%c0_1, %c0_2] : memref<1x256xf32, #tpu.memory_space<vmem>>, vector<1x256xf32>
    %2 = vector.broadcast %1 : vector<1x256xf32> to vector<256x256xf32>
    %3 = arith.mulf %0, %2 : vector<256x256xf32>
    %cst = arith.constant dense<0.000000e+00> : vector<256xf32>
    %4 = vector.multi_reduction <add>, %3, %cst [1] : vector<256x256xf32> to vector<256xf32>
    %5 = vector.shape_cast %4 : vector<256xf32> to vector<256x1xf32>
    %c0_3 = arith.constant 0 : index
    %6 = memref.load %arg3[%c0_3] : memref<1xf32, #tpu.memory_space<smem>>
    %7 = vector.broadcast %6 : f32 to vector<256x1xf32>
    %8 = arith.addf %5, %7 : vector<256x1xf32>
    %c0_4 = arith.constant 0 : index
    %c0_5 = arith.constant 0 : index
    %9 = vector.load %arg4[%c0_4, %c0_5] : memref<256x1xf32, #tpu.memory_space<vmem>>, vector<256x1xf32>
    tpu.vector_store %arg4[%c0_4, %c0_5], %8 {strides = array<i32>} : memref<256x1xf32, #tpu.memory_space<vmem>>, vector<256x1xf32>,
    return
  }
  func.func @transform_0(%arg0: i32) -> (i32, i32) {
    %c0_i32 = arith.constant 0 : i32
    %c0_i32_0 = arith.constant 0 : i32
    return %arg0, %c0_i32 : i32, i32
  }
  func.func @transform_1(%arg0: i32) -> (i32, i32) {
    %c0_i32 = arith.constant 0 : i32
    %c0_i32_0 = arith.constant 0 : i32
    %c0_i32_1 = arith.constant 0 : i32
    return %c0_i32, %c0_i32_0 : i32, i32
  }
  func.func @transform_2(%arg0: i32) -> i32 {
    %c0_i32 = arith.constant 0 : i32
    %c0_i32_0 = arith.constant 0 : i32
    return %c0_i32 : i32
  }
  func.func @transform_3(%arg0: i32) -> (i32, i32) {
    %c0_i32 = arith.constant 0 : i32
    %c0_i32_0 = arith.constant 0 : i32
    return %arg0, %c0_i32 : i32, i32
  }
}

</mosaic_0001>

<bundles_post_ra>
// kernel: tpu_custom_call.1
= control target key start
LH: loop header
LB: loop body
LE: loop exit
PB: predicated region body
PF: predicated region fallthrough
CT: control target
= control target key end

     0   :  { %9 = vsyncpa [#allocation4], 0  ;;  %s362_s15 = smov [#allocation3]   ;;  %s363_s17 = smov 256   ;;  %s633_s0 = inlined_call_operand.hbm [shape: f32[256,256], index: 0, kind: input, shape index: {}]   ;;  %s634_s1 = inlined_call_operand.vmem [shape: f32[1,256], index: 1, kind: input, shape index: {}]   ;;  %s635_s2 = inlined_call_operand.<no memory space> [shape: f32[1], index: 2, kind: input, shape index: {}]   ;;  %s636_s3 = inlined_call_operand.vmem [shape: f32[256,1], index: 3, kind: output, shape index: {}]  }
   0x1   :  { %s14_s14 = sshll.u32 %s633_s0, 4  ;;  %s16_s16 = sshll.u32 %s362_s15, 4  ;;  %s15_s14 = int_to_ptr.hbm [resolvable:$true] %s14_s14  ;;  %s17_s16 = int_to_ptr.vmem [resolvable:$true] %s16_s16 }
   0x2   :  { %s364_s18 = smov 16  }
   0x3   :  { %22 = dma.hbm_to_vmem [thread:$0]  %s15_s14, 8192, %s17_s16, [#allocation4], %s363_s17, %s363_s17, %s364_s18  }
   0x4   :  { %360 = dma.done.wait [#allocation4], 8192  }
   0x5   :  { %361 = vsyncadd [#allocation4], 4294959104  ;;  %v35_v0 = vld [vmem:[#allocation3 + $0x20] sm:$0xff]  ;;  %v36_v1 = vld [vmem:[#allocation3 + $0x28] sm:$0xff]  ;;  %vm295_vm0 = vcmask 7168  }
   0x6   :  { %v95_v2 = vld [vmem:[%s634_s1] sm:$0x3]  ;;  %v32_v6 = vld [vmem:[#allocation3 + $0x8] sm:$0xff]  ;;  %v37_v13 = vld [vmem:[#allocation3 + $0x30] sm:$0xff] }
   0x7   :  { %v391_v3 = vperm.slane %v95_v2, 0  ;;  %v393_v4 = vperm.slane %v95_v2, 1  ;;  %v31_v5 = vld [vmem:[#allocation3] sm:$0xff]  ;;  %v40_v8 = vld [vmem:[#allocation3 + $0x48] sm:$0xff]  ;;  %v38_v16 = vld [vmem:[#allocation3 + $0x38] sm:$0xff] }
   0x8   :  { %v39_v7 = vld [vmem:[#allocation3 + $0x40] sm:$0xff]  ;;  %v33_v17 = vld [vmem:[#allocation3 + $0x10] sm:$0xff]  ;;  %v34_v18 = vld [vmem:[#allocation3 + $0x18] sm:$0xff] }
   0x9   :  { %v105_v9 = vmul.f32 %v391_v3, %v35_v0  ;;  %v106_v10 = vmul.f32 %v393_v4, %v36_v1  ;;  %v101_v11 = vmul.f32 %v391_v3, %v31_v5  ;;  %v102_v12 = vmul.f32 %v393_v4, %v32_v6  ;;  %v41_v21 = vld [vmem:[#allocation3 + $0x50] sm:$0xff]  ;;  %v42_v22 = vld [vmem:[#allocation3 + $0x58] sm:$0xff]  ;;  %v43_v35 = vld [vmem:[#allocation3 + $0x60] sm:$0xff] }
   0xa   :  { %v109_v14 = vmul.f32 %v391_v3, %v39_v7  ;;  %v110_v15 = vmul.f32 %v393_v4, %v40_v8  ;;  %v107_v24 = vmul.f32 %v391_v3, %v37_v13  ;;  %v108_v25 = vmul.f32 %v393_v4, %v38_v16  ;;  %v45_v32 = vld [vmem:[#allocation3 + $0x70] sm:$0xff]  ;;  %v46_v34 = vld [vmem:[#allocation3 + $0x78] sm:$0xff]  ;;  %v44_v36 = vld [vmem:[#allocation3 + $0x68] sm:$0xff] }
   0xb   :  { %v171_v19 = vadd.f32 %v106_v10, %v105_v9  ;;  %v165_v20 = vadd.f32 %v102_v12, %v101_v11  ;;  %v103_v26 = vmul.f32 %v391_v3, %v33_v17  ;;  %v104_v27 = vmul.f32 %v393_v4, %v34_v18  ;;  %v47_v37 = vld [vmem:[#allocation3 + $0x80] sm:$0xff]  ;;  %v48_v38 = vld [vmem:[#allocation3 + $0x88] sm:$0xff]  ;;  %v49_v50 = vld [vmem:[#allocation3 + $0x90] sm:$0xff] }
   0xc   :  { %v177_v23 = vadd.f32 %v110_v15, %v109_v14  ;;  %v111_v28 = vmul.f32 %v391_v3, %v41_v21  ;;  %v112_v29 = vmul.f32 %v393_v4, %v42_v22  ;;  %v174_v30 = vadd.f32 %v108_v25, %v107_v24  ;;  %v51_v47 = vld [vmem:[#allocation3 + $0xa0] sm:$0xff]  ;;  %v52_v49 = vld [vmem:[#allocation3 + $0xa8] sm:$0xff]  ;;  %v50_v51 = vld [vmem:[#allocation3 + $0x98] sm:$0xff] }
   0xd   :  { %172 = vadd.xlane.f32.xlu1 %v171_v19  ;;  %166 = vadd.xlane.f32.xlu0 %v165_v20  ;;  %v168_v31 = vadd.f32 %v104_v27, %v103_v26  ;;  %v115_v39 = vmul.f32 %v391_v3, %v45_v32  ;;  %v116_v40 = vmul.f32 %v393_v4, %v46_v34  ;;  %v53_v52 = vld [vmem:[#allocation3 + $0xb0] sm:$0xff]  ;;  %v54_v53 = vld [vmem:[#allocation3 + $0xb8] sm:$0xff]  ;;  %v55_v1 = vld [vmem:[#allocation3 + $0xc0] sm:$0xff] }
   0xe   :  { %178 = vadd.xlane.f32.xlu2 %v177_v23  ;;  %v180_v33 = vadd.f32 %v112_v29, %v111_v28  ;;  %v113_v41 = vmul.f32 %v391_v3, %v43_v35  ;;  %v114_v42 = vmul.f32 %v393_v4, %v44_v36  ;;  %v117_v43 = vmul.f32 %v391_v3, %v47_v37  ;;  %v57_v62 = vld [vmem:[#allocation3 + $0xd0] sm:$0xff]  ;;  %v58_v63 = vld [vmem:[#allocation3 + $0xd8] sm:$0xff]  ;;  %v56_v2 = vld [vmem:[#allocation3 + $0xc8] sm:$0xff] }
   0xf   :  { %v118_v44 = vmul.f32 %v393_v4, %v48_v38  ;;  %v186_v45 = vadd.f32 %v116_v40, %v115_v39  ;;  %v121_v54 = vmul.f32 %v391_v3, %v51_v47  ;;  %v122_v55 = vmul.f32 %v393_v4, %v52_v49  ;;  %v59_v5 = vld [vmem:[#allocation3 + $0xe0] sm:$0xff]  ;;  %v60_v6 = vld [vmem:[#allocation3 + $0xe8] sm:$0xff]  ;;  %v81_v13 = vld [vmem:[#allocation3 + $0x190] sm:$0xff] }
  0x10   :  { %v183_v46 = vadd.f32 %v114_v42, %v113_v41  ;;  %v119_v56 = vmul.f32 %v391_v3, %v49_v50  ;;  %v120_v57 = vmul.f32 %v393_v4, %v50_v51  ;;  %v123_v58 = vmul.f32 %v391_v3, %v53_v52  ;;  %v82_v14 = vld [vmem:[#allocation3 + $0x198] sm:$0xff]  ;;  %v79_v18 = vld [vmem:[#allocation3 + $0x180] sm:$0xff]  ;;  %v80_v19 = vld [vmem:[#allocation3 + $0x188] sm:$0xff] }
  0x11   :  { %v189_v48 = vadd.f32 %v118_v44, %v117_v43  ;;  %v124_v59 = vmul.f32 %v393_v4, %v54_v53  ;;  %v195_v60 = vadd.f32 %v122_v55, %v121_v54  ;;  %v127_v7 = vmul.f32 %v391_v3, %v57_v62  ;;  %v63_v21 = vld [vmem:[#allocation3 + $0x100] sm:$0xff]  ;;  %v64_v22 = vld [vmem:[#allocation3 + $0x108] sm:$0xff]  ;;  %v61_v27 = vld [vmem:[#allocation3 + $0xf0] sm:$0xff] }
  0x12   :  { %v192_v61 = vadd.f32 %v120_v57, %v119_v56  ;;  %v128_v8 = vmul.f32 %v393_v4, %v58_v63  ;;  %v125_v9 = vmul.f32 %v391_v3, %v55_v1  ;;  %v126_v10 = vmul.f32 %v393_v4, %v56_v2  ;;  %v62_v28 = vld [vmem:[#allocation3 + $0xf8] sm:$0xff]  ;;  %v65_v29 = vld [vmem:[#allocation3 + $0x110] sm:$0xff]  ;;  %v83_v36 = vld [vmem:[#allocation3 + $0x1a0] sm:$0xff] }
  0x13   :  { %v198_v0 = vadd.f32 %v124_v59, %v123_v58  ;;  %v129_v11 = vmul.f32 %v391_v3, %v59_v5  ;;  %v130_v12 = vmul.f32 %v393_v4, %v60_v6  ;;  %v151_v15 = vmul.f32 %v391_v3, %v81_v13  ;;  %v84_v37 = vld [vmem:[#allocation3 + $0x1a8] sm:$0xff]  ;;  %v87_v42 = vld [vmem:[#allocation3 + $0x1c0] sm:$0xff]  ;;  %v86_v49 = vld [vmem:[#allocation3 + $0x1b8] sm:$0xff] }
  0x14   :  { %v152_v16 = vmul.f32 %v393_v4, %v82_v14  ;;  %v204_v17 = vadd.f32 %v128_v8, %v127_v7  ;;  %v201_v20 = vadd.f32 %v126_v10, %v125_v9  ;;  %v149_v24 = vmul.f32 %v391_v3, %v79_v18  ;;  %v88_v43 = vld [vmem:[#allocation3 + $0x1c8] sm:$0xff]  ;;  %v69_v51 = vld [vmem:[#allocation3 + $0x130] sm:$0xff]  ;;  %v70_v52 = vld [vmem:[#allocation3 + $0x138] sm:$0xff] }
  0x15   :  { %175 = vadd.xlane.f32.xlu1 %v174_v30  ;;  %169 = vadd.xlane.f32.xlu0 %v168_v31  ;;  %v150_v25 = vmul.f32 %v393_v4, %v80_v19  ;;  %v207_v26 = vadd.f32 %v130_v12, %v129_v11  ;;  %v66_v30 = vld [vmem:[#allocation3 + $0x118] sm:$0xff]  ;;  %v133_v32 = vmul.f32 %v391_v3, %v63_v21  ;;  %v67_v57 = vld [vmem:[#allocation3 + $0x120] sm:$0xff]  ;;  %v68_v58 = vld [vmem:[#allocation3 + $0x128] sm:$0xff] }
  0x16   :  { %181 = vadd.xlane.f32.xlu2 %v180_v33  ;;  %v427_v23 = vadd.f32 %v152_v16, %v151_v15  ;;  %v134_v33 = vmul.f32 %v393_v4, %v64_v22  ;;  %v131_v34 = vmul.f32 %v391_v3, %v61_v27  ;;  %v132_v35 = vmul.f32 %v393_v4, %v62_v28  ;;  %v71_v59 = vld [vmem:[#allocation3 + $0x140] sm:$0xff]  ;;  %v89_v2 = vld [vmem:[#allocation3 + $0x1d0] sm:$0xff]  ;;  %v90_v5 = vld [vmem:[#allocation3 + $0x1d8] sm:$0xff] }
  0x17   :  { %v431_v31 = vadd.f32 %v150_v25, %v149_v24  ;;  %v135_v38 = vmul.f32 %v391_v3, %v65_v29  ;;  %v136_v39 = vmul.f32 %v393_v4, %v66_v30  ;;  %v153_v40 = vmul.f32 %v391_v3, %v83_v36  ;;  %v93_v10 = vld [vmem:[#allocation3 + $0x1f0] sm:$0xff]  ;;  %v94_v11 = vld [vmem:[#allocation3 + $0x1f8] sm:$0xff]  ;;  %v91_v16 = vld [vmem:[#allocation3 + $0x1e0] sm:$0xff] }
  0x18   :  { %v154_v41 = vmul.f32 %v393_v4, %v84_v37  ;;  %v157_v44 = vmul.f32 %v391_v3, %v87_v42  ;;  %v210_v50 = vadd.f32 %v132_v35, %v131_v34  ;;  %v156_v55 = vmul.f32 %v393_v4, %v86_v49  ;;  %v75_v19 = vld [vmem:[#allocation3 + $0x160] sm:$0xff]  ;;  %v76_v25 = vld [vmem:[#allocation3 + $0x168] sm:$0xff]  ;;  %v74_v27 = vld [vmem:[#allocation3 + $0x158] sm:$0xff] }
  0x19   :  { %v216_v56 = vadd.f32 %v136_v39, %v135_v38  ;;  %v139_v62 = vmul.f32 %v391_v3, %v69_v51  ;;  %v140_v63 = vmul.f32 %v393_v4, %v70_v52  ;;  %v138_v1 = vmul.f32 %v393_v4, %v68_v58  ;;  %v77_v28 = vld [vmem:[#allocation3 + $0x170] sm:$0xff]  ;;  %v78_v29 = vld [vmem:[#allocation3 + $0x178] sm:$0xff] }
  0x1a   :  { %v443_v47 = vadd.f32 %v154_v41, %v153_v40  ;;  %v141_v6 = vmul.f32 %v391_v3, %v71_v59  ;;  %v159_v8 = vmul.f32 %v391_v3, %v89_v2  ;;  %v160_v9 = vmul.f32 %v393_v4, %v90_v5 }
  0x1b   :  { %v163_v12 = vmul.f32 %v391_v3, %v93_v10  ;;  %v164_v13 = vmul.f32 %v393_v4, %v94_v11  ;;  %v222_v14 = vadd.f32 %v140_v63, %v139_v62  ;;  %v161_v21 = vmul.f32 %v391_v3, %v91_v16 }
  0x1c   :  { %v252_v15 = vadd.f32 %v160_v9, %v159_v8  ;;  %v144_v35 = vmul.f32 %v393_v4, %v74_v27  ;;  %v147_v36 = vmul.f32 %v391_v3, %v77_v28  ;;  %v148_v37 = vmul.f32 %v393_v4, %v78_v29 }
  0x1d   :  { %187 = vadd.xlane.f32.xlu1 %v186_v45  ;;  %184 = vadd.xlane.f32.xlu0 %v183_v46  ;;  %v158_v45 = vmul.f32 %v393_v4, %v88_v43  ;;  %v213_v46 = vadd.f32 %v134_v33, %v133_v32  ;;  %v145_v32 = vmul.f32 %v391_v3, %v75_v19 }
  0x1e   :  { %190 = vadd.xlane.f32.xlu2 %v189_v48  ;;  %v85_v48 = vld [vmem:[#allocation3 + $0x1b0] sm:$0xff]  ;;  %v146_v33 = vmul.f32 %v393_v4, %v76_v25  ;;  %v234_v40 = vadd.f32 %v148_v37, %v147_v36 }
  0x1f   :  { %v249_v53 = vadd.f32 %v158_v45, %v157_v44  ;;  %v155_v54 = vmul.f32 %v391_v3, %v85_v48 }
  0x20   :  { %v231_v38 = vadd.f32 %v146_v33, %v145_v32 }
  0x25   :  { %196 = vadd.xlane.f32.xlu1 %v195_v60  ;;  %193 = vadd.xlane.f32.xlu0 %v192_v61  ;;  %v72_v60 = vld [vmem:[#allocation3 + $0x148] sm:$0xff]  ;;  %v246_v61 = vadd.f32 %v156_v55, %v155_v54 }
  0x26   :  { %199 = vadd.xlane.f32.xlu2 %v198_v0  ;;  %v137_v0 = vmul.f32 %v391_v3, %v67_v57  ;;  %v142_v7 = vmul.f32 %v393_v4, %v72_v60 }
  0x28   :  { %v219_v18 = vadd.f32 %v138_v1, %v137_v0  ;;  %v225_v24 = vadd.f32 %v142_v7, %v141_v6 }
  0x2d   :  { %205 = vadd.xlane.f32.xlu1 %v204_v17  ;;  %202 = vadd.xlane.f32.xlu0 %v201_v20  ;;  %v92_v17 = vld [vmem:[#allocation3 + $0x1e8] sm:$0xff]  ;;  %v258_v20 = vadd.f32 %v164_v13, %v163_v12 }
  0x2e   :  { %208 = vadd.xlane.f32.xlu2 %v207_v26  ;;  %v162_v22 = vmul.f32 %v393_v4, %v92_v17  ;;  %v73_v26 = vld [vmem:[#allocation3 + $0x150] sm:$0xff] }
  0x2f   :  { %v143_v34 = vmul.f32 %v391_v3, %v73_v26  ;;  %v471_v3 = vstv %s635_s2 }
  0x30   :  { %v255_v30 = vadd.f32 %v162_v22, %v161_v21 }
  0x31   :  { %v228_v39 = vadd.f32 %v144_v35, %v143_v34 }
  0x35   :  { %214 = vadd.xlane.f32.xlu1 %v213_v46  ;;  %211 = vadd.xlane.f32.xlu0 %v210_v50 }
  0x36   :  { %217 = vadd.xlane.f32.xlu2 %v216_v56 }
  0x3d   :  { %223 = vadd.xlane.f32.xlu1 %v222_v14  ;;  %220 = vadd.xlane.f32.xlu0 %v219_v18 }
  0x3e   :  { %226 = vadd.xlane.f32.xlu2 %v225_v24 }
  0x45   :  { %232 = vadd.xlane.f32.xlu1 %v231_v38  ;;  %229 = vadd.xlane.f32.xlu0 %v228_v39 }
  0x46   :  { %235 = vadd.xlane.f32.xlu2 %v234_v40 }
  0x4d   :  { %241 = vadd.xlane.f32.xlu1 %v427_v23  ;;  %238 = vadd.xlane.f32.xlu0 %v431_v31 }
  0x4e   :  { %244 = vadd.xlane.f32.xlu2 %v443_v47 }
  0x55   :  { %250 = vadd.xlane.f32.xlu1 %v249_v53  ;;  %247 = vadd.xlane.f32.xlu0 %v246_v61 }
  0x56   :  { %253 = vadd.xlane.f32.xlu2 %v252_v15 }
  0x5d   :  { %259 = vadd.xlane.f32.xlu1 %v258_v20  ;;  %256 = vadd.xlane.f32.xlu0 %v255_v30 }
  0x80   :  { %v173_v4 = vpop.xlane.xlu1 %172  ;;  %v167_v41 = vpop.xlane.xlu0 %166 }
  0x81   :  { %v265_v42 = vadd.f32 %v471_v3, %v173_v4  ;;  %v263_v23 = vadd.f32 %v471_v3, %v167_v41  ;;  %v179_v31 = vpop.xlane.xlu2 %178 }
  0x82   :  { %v267_v43 = vadd.f32 %v471_v3, %v179_v31 }
  0x83   :  { %298 = vst.msk [vmem:[%s636_s3 + $0x10] sm:$0xff] %vm295_vm0, %v265_v42 }
  0x84   :  { %296 = vst.msk [vmem:[%s636_s3] sm:$0xff] %vm295_vm0, %v263_v23 }
  0x85   :  { %300 = vst.msk [vmem:[%s636_s3 + $0x20] sm:$0xff] %vm295_vm0, %v267_v43 }
  0x88   :  { %v176_v44 = vpop.xlane.xlu1 %175  ;;  %v170_v45 = vpop.xlane.xlu0 %169 }
  0x89   :  { %v266_v46 = vadd.f32 %v471_v3, %v176_v44  ;;  %v264_v47 = vadd.f32 %v471_v3, %v170_v45  ;;  %v182_v48 = vpop.xlane.xlu2 %181 }
  0x8a   :  { %v268_v49 = vadd.f32 %v471_v3, %v182_v48 }
  0x8b   :  { %299 = vst.msk [vmem:[%s636_s3 + $0x18] sm:$0xff] %vm295_vm0, %v266_v46 }
  0x8c   :  { %297 = vst.msk [vmem:[%s636_s3 + $0x8] sm:$0xff] %vm295_vm0, %v264_v47 }
  0x8d   :  { %301 = vst.msk [vmem:[%s636_s3 + $0x28] sm:$0xff] %vm295_vm0, %v268_v49 }
  0x90   :  { %v188_v50 = vpop.xlane.xlu1 %187  ;;  %v185_v51 = vpop.xlane.xlu0 %184 }
  0x91   :  { %v270_v52 = vadd.f32 %v471_v3, %v188_v50  ;;  %v269_v53 = vadd.f32 %v471_v3, %v185_v51  ;;  %v191_v54 = vpop.xlane.xlu2 %190 }
  0x92   :  { %v271_v55 = vadd.f32 %v471_v3, %v191_v54 }
  0x93   :  { %303 = vst.msk [vmem:[%s636_s3 + $0x38] sm:$0xff] %vm295_vm0, %v270_v52 }
  0x94   :  { %302 = vst.msk [vmem:[%s636_s3 + $0x30] sm:$0xff] %vm295_vm0, %v269_v53 }
  0x95   :  { %304 = vst.msk [vmem:[%s636_s3 + $0x40] sm:$0xff] %vm295_vm0, %v271_v55 }
  0x98   :  { %v197_v56 = vpop.xlane.xlu1 %196  ;;  %v194_v57 = vpop.xlane.xlu0 %193 }
  0x99   :  { %v273_v58 = vadd.f32 %v471_v3, %v197_v56  ;;  %v272_v59 = vadd.f32 %v471_v3, %v194_v57  ;;  %v200_v60 = vpop.xlane.xlu2 %199 }
  0x9a   :  { %v274_v61 = vadd.f32 %v471_v3, %v200_v60 }
  0x9b   :  { %306 = vst.msk [vmem:[%s636_s3 + $0x50] sm:$0xff] %vm295_vm0, %v273_v58 }
  0x9c   :  { %305 = vst.msk [vmem:[%s636_s3 + $0x48] sm:$0xff] %vm295_vm0, %v272_v59 }
  0x9d   :  { %307 = vst.msk [vmem:[%s636_s3 + $0x58] sm:$0xff] %vm295_vm0, %v274_v61 }
  0xa0   :  { %v206_v62 = vpop.xlane.xlu1 %205  ;;  %v203_v63 = vpop.xlane.xlu0 %202 }
  0xa1   :  { %v276_v0 = vadd.f32 %v471_v3, %v206_v62  ;;  %v275_v1 = vadd.f32 %v471_v3, %v203_v63  ;;  %v209_v2 = vpop.xlane.xlu2 %208 }
  0xa2   :  { %v277_v5 = vadd.f32 %v471_v3, %v209_v2 }
  0xa3   :  { %309 = vst.msk [vmem:[%s636_s3 + $0x68] sm:$0xff] %vm295_vm0, %v276_v0 }
  0xa4   :  { %308 = vst.msk [vmem:[%s636_s3 + $0x60] sm:$0xff] %vm295_vm0, %v275_v1 }
  0xa5   :  { %310 = vst.msk [vmem:[%s636_s3 + $0x70] sm:$0xff] %vm295_vm0, %v277_v5 }
  0xa8   :  { %v215_v6 = vpop.xlane.xlu1 %214  ;;  %v212_v7 = vpop.xlane.xlu0 %211 }
  0xa9   :  { %v279_v8 = vadd.f32 %v471_v3, %v215_v6  ;;  %v278_v9 = vadd.f32 %v471_v3, %v212_v7  ;;  %v218_v10 = vpop.xlane.xlu2 %217 }
  0xaa   :  { %v280_v11 = vadd.f32 %v471_v3, %v218_v10 }
  0xab   :  { %312 = vst.msk [vmem:[%s636_s3 + $0x80] sm:$0xff] %vm295_vm0, %v279_v8 }
  0xac   :  { %311 = vst.msk [vmem:[%s636_s3 + $0x78] sm:$0xff] %vm295_vm0, %v278_v9 }
  0xad   :  { %313 = vst.msk [vmem:[%s636_s3 + $0x88] sm:$0xff] %vm295_vm0, %v280_v11 }
  0xb0   :  { %v224_v12 = vpop.xlane.xlu1 %223  ;;  %v221_v13 = vpop.xlane.xlu0 %220 }
  0xb1   :  { %v282_v14 = vadd.f32 %v471_v3, %v224_v12  ;;  %v281_v15 = vadd.f32 %v471_v3, %v221_v13  ;;  %v227_v16 = vpop.xlane.xlu2 %226 }
  0xb2   :  { %v283_v17 = vadd.f32 %v471_v3, %v227_v16 }
  0xb3   :  { %315 = vst.msk [vmem:[%s636_s3 + $0x98] sm:$0xff] %vm295_vm0, %v282_v14 }
  0xb4   :  { %314 = vst.msk [vmem:[%s636_s3 + $0x90] sm:$0xff] %vm295_vm0, %v281_v15 }
  0xb5   :  { %316 = vst.msk [vmem:[%s636_s3 + $0xa0] sm:$0xff] %vm295_vm0, %v283_v17 }
  0xb8   :  { %v233_v18 = vpop.xlane.xlu1 %232  ;;  %v230_v19 = vpop.xlane.xlu0 %229 }
  0xb9   :  { %v285_v20 = vadd.f32 %v471_v3, %v233_v18  ;;  %v284_v21 = vadd.f32 %v471_v3, %v230_v19  ;;  %v236_v22 = vpop.xlane.xlu2 %235 }
  0xba   :  { %v286_v24 = vadd.f32 %v471_v3, %v236_v22 }
  0xbb   :  { %318 = vst.msk [vmem:[%s636_s3 + $0xb0] sm:$0xff] %vm295_vm0, %v285_v20 }
  0xbc   :  { %317 = vst.msk [vmem:[%s636_s3 + $0xa8] sm:$0xff] %vm295_vm0, %v284_v21 }
  0xbd   :  { %319 = vst.msk [vmem:[%s636_s3 + $0xb8] sm:$0xff] %vm295_vm0, %v286_v24 }
  0xc0   :  { %v242_v25 = vpop.xlane.xlu1 %241  ;;  %v239_v26 = vpop.xlane.xlu0 %238 }
  0xc1   :  { %v288_v27 = vadd.f32 %v471_v3, %v242_v25  ;;  %v287_v28 = vadd.f32 %v471_v3, %v239_v26  ;;  %v245_v29 = vpop.xlane.xlu2 %244 }
  0xc2   :  { %v289_v30 = vadd.f32 %v471_v3, %v245_v29 }
  0xc3   :  { %321 = vst.msk [vmem:[%s636_s3 + $0xc8] sm:$0xff] %vm295_vm0, %v288_v27 }
  0xc4   :  { %320 = vst.msk [vmem:[%s636_s3 + $0xc0] sm:$0xff] %vm295_vm0, %v287_v28 }
  0xc5   :  { %322 = vst.msk [vmem:[%s636_s3 + $0xd0] sm:$0xff] %vm295_vm0, %v289_v30 }
  0xc8   :  { %v251_v32 = vpop.xlane.xlu1 %250  ;;  %v248_v33 = vpop.xlane.xlu0 %247 }
  0xc9   :  { %v291_v34 = vadd.f32 %v471_v3, %v251_v32  ;;  %v290_v35 = vadd.f32 %v471_v3, %v248_v33  ;;  %v254_v36 = vpop.xlane.xlu2 %253 }
  0xca   :  { %v292_v37 = vadd.f32 %v471_v3, %v254_v36 }
  0xcb   :  { %324 = vst.msk [vmem:[%s636_s3 + $0xe0] sm:$0xff] %vm295_vm0, %v291_v34 }
  0xcc   :  { %323 = vst.msk [vmem:[%s636_s3 + $0xd8] sm:$0xff] %vm295_vm0, %v290_v35 }
  0xcd   :  { %325 = vst.msk [vmem:[%s636_s3 + $0xe8] sm:$0xff] %vm295_vm0, %v292_v37 }
  0xd0   :  { %v260_v38 = vpop.xlane.xlu1 %259  ;;  %v257_v39 = vpop.xlane.xlu0 %256 }
  0xd1   :  { %v294_v40 = vadd.f32 %v471_v3, %v260_v38  ;;  %v293_v4 = vadd.f32 %v471_v3, %v257_v39 }
  0xd3   :  { %327 = vst.msk [vmem:[%s636_s3 + $0xf8] sm:$0xff] %vm295_vm0, %v294_v40 }
  0xd4   :  { %326 = vst.msk [vmem:[%s636_s3 + $0xf0] sm:$0xff] %vm295_vm0, %v293_v4 }
  0xd5   :  { %332 = vsyncpa [#allocation4], 1 }

</bundles_post_ra>
